<compile_context>
chip_gen: v5e
topology: v5e:2x2
jax: 0.10.0
libtpu: 0.0.40
codegen_flags: <defaults>
</compile_context>

<pallas_src>
import functools

import jax
import jax.numpy as jnp
from jax.experimental import pallas as pl
from jax.experimental.pallas import tpu as pltpu


def _round_up(x: int, m: int) -> int:
    return ((x + m - 1) // m) * m


def _cdiv(a: int, b: int) -> int:
    return (a + b - 1) // b


def _log_softmax_store(logits, o_ref):
    # Numerically stable LogSoftmax(dim=1) in f32. Padded output columns carry bias
    # -1e30 so exp underflows to exactly 0 and the padded reduction equals the real one.
    m = jnp.max(logits, axis=-1, keepdims=True)
    shifted = logits - m
    lse = jnp.log(jnp.sum(jnp.exp(shifted), axis=-1, keepdims=True))
    o_ref[...] = (shifted - lse).astype(o_ref.dtype)


def _mlp2_kernel(x_ref, w1_ref, b1_ref, w2_ref, b2_ref, o_ref, *, nonlinear: str):
    # x: [TB, D_in] bf16, w1: [D_in, H_pad] bf16, b1: [1, H_pad] f32,
    # w2: [H_pad, O_pad] bf16, b2: [1, O_pad] f32, o: [TB, O_pad]
    x = x_ref[...]
    h = jnp.dot(x, w1_ref[...], preferred_element_type=jnp.float32) + b1_ref[...]
    if nonlinear == "relu":
        h = jnp.maximum(h, 0.0)
    elif nonlinear == "tanh":
        h = jnp.tanh(h)
    logits = jnp.dot(h.astype(jnp.bfloat16), w2_ref[...],
                     preferred_element_type=jnp.float32) + b2_ref[...]
    _log_softmax_store(logits, o_ref)


def _mlp1_kernel(x_ref, w_ref, b_ref, o_ref):
    # Fused (identity-nonlinearity) path: single matmul + log-softmax.
    logits = jnp.dot(x_ref[...], w_ref[...],
                     preferred_element_type=jnp.float32) + b_ref[...]
    _log_softmax_store(logits, o_ref)


def prepare_params(w1, b1, w2, b2, nonlinear):
    """Done once: pad feature dims to 128 lanes, cast weights to bf16, and for the
    identity nonlinearity fold the two Linear layers into one (in f32, then cast)."""
    d_in, hidden = w1.shape
    _, d_out = w2.shape
    o_pad = _round_up(d_out, 128)

    if nonlinear not in ("relu", "tanh"):
        # Identity: W = W1 @ W2, b = b1 @ W2 + b2  (f32 fold, bf16 storage).
        w = jnp.dot(w1, w2)
        b = jnp.dot(jnp.reshape(b1, (1, -1)), w2) + jnp.reshape(b2, (1, -1))
        wp = jnp.zeros((d_in, o_pad), jnp.bfloat16).at[:, :d_out].set(w.astype(jnp.bfloat16))
        bp = jnp.full((1, o_pad), -1e30, jnp.float32).at[:, :d_out].set(b)
        return {"mode": "fused", "w": wp, "b": bp, "d_out": d_out, "nonlinear": nonlinear}

    h_pad = _round_up(hidden, 128)
    w1p = jnp.zeros((d_in, h_pad), jnp.bfloat16).at[:, :hidden].set(w1.astype(jnp.bfloat16))
    b1p = jnp.zeros((1, h_pad), jnp.float32).at[:, :hidden].set(jnp.reshape(b1, (1, -1)))
    w2p = jnp.zeros((h_pad, o_pad), jnp.bfloat16).at[:hidden, :d_out].set(w2.astype(jnp.bfloat16))
    b2p = jnp.full((1, o_pad), -1e30, jnp.float32).at[:, :d_out].set(jnp.reshape(b2, (1, -1)))
    return {"mode": "two_layer", "w1": w1p, "b1": b1p, "w2": w2p, "b2": b2p,
            "d_out": d_out, "nonlinear": nonlinear}


def mlp_forward(x, params, *, tile_b=1024, out_dtype=jnp.bfloat16):
    B, d_in = x.shape
    d_out = params["d_out"]

    # Batch tiling: big tiles amortize per-step grid overhead; tb multiple of 16
    # (bf16 packs 16 rows / sublane-packed vreg); when the grid has >1 step, keep
    # the step count even so v7x's 2 TensorCores split the batch evenly.
    n = max(1, _cdiv(B, tile_b))
    if n > 1:
        n = _round_up(n, 2)
    tb = _round_up(_cdiv(B, n), 16)
    b_pad = n * tb
    if b_pad != B:
        x = jnp.pad(x, ((0, b_pad - B), (0, 0)))
    x = x.astype(jnp.bfloat16)
    grid = (n,)
    out_bytes = jnp.dtype(out_dtype).itemsize

    if params["mode"] == "two_layer":
        w1, b1, w2, b2 = params["w1"], params["b1"], params["w2"], params["b2"]
        h_pad, o_pad = w1.shape[1], w2.shape[1]
        kernel = functools.partial(_mlp2_kernel, nonlinear=params["nonlinear"])
        in_specs = [
            pl.BlockSpec((tb, d_in), lambda i: (i, 0)),      # x: tiled on batch (d_in NOT padded)
            pl.BlockSpec((d_in, h_pad), lambda i: (0, 0)),   # w1: VMEM-resident
            pl.BlockSpec((1, h_pad), lambda i: (0, 0)),      # b1: VMEM-resident
            pl.BlockSpec((h_pad, o_pad), lambda i: (0, 0)),  # w2: VMEM-resident
            pl.BlockSpec((1, o_pad), lambda i: (0, 0)),      # b2: VMEM-resident
        ]
        operands = (x, w1, b1, w2, b2)
        flops = 2 * b_pad * (d_in * h_pad + h_pad * o_pad)
        transcendentals = b_pad * o_pad + (b_pad * h_pad if params["nonlinear"] == "tanh" else 0)
        bytes_accessed = (b_pad * d_in * 2 + d_in * h_pad * 2 + h_pad * o_pad * 2
                          + (h_pad + o_pad) * 4 + b_pad * o_pad * out_bytes)
    else:
        w, b = params["w"], params["b"]
        o_pad = w.shape[1]
        kernel = _mlp1_kernel
        in_specs = [
            pl.BlockSpec((tb, d_in), lambda i: (i, 0)),      # x: tiled on batch
            pl.BlockSpec((d_in, o_pad), lambda i: (0, 0)),   # folded W: VMEM-resident
            pl.BlockSpec((1, o_pad), lambda i: (0, 0)),      # folded b: VMEM-resident
        ]
        operands = (x, w, b)
        flops = 2 * b_pad * d_in * o_pad
        transcendentals = b_pad * o_pad
        bytes_accessed = (b_pad * d_in * 2 + d_in * o_pad * 2 + o_pad * 4
                          + b_pad * o_pad * out_bytes)

    out = pl.pallas_call(
        kernel,
        out_shape=jax.ShapeDtypeStruct((b_pad, o_pad), out_dtype),
        grid=grid,
        in_specs=in_specs,
        out_specs=pl.BlockSpec((tb, o_pad), lambda i: (i, 0)),
        compiler_params=pltpu.CompilerParams(
            dimension_semantics=("parallel",),
        ),
        cost_estimate=pl.CostEstimate(
            flops=int(flops),
            transcendentals=int(transcendentals),
            bytes_accessed=int(bytes_accessed),
        ),
    )(*operands)

    # Slice off batch / lane padding; return f32 log-probs like the PyTorch module.
    return out[:B, :d_out].astype(jnp.float32)


def init_params(key, input_dim, output_dim, hidden_size):
    """Deterministic init mimicking PyTorch nn.Linear defaults:
    U(-1/sqrt(fan_in), 1/sqrt(fan_in)). Weights stored as [in, out]."""
    k1, k2, k3, k4 = jax.random.split(key, 4)
    bound1 = 1.0 / jnp.sqrt(input_dim)
    bound2 = 1.0 / jnp.sqrt(hidden_size)
    w1 = jax.random.uniform(k1, (input_dim, hidden_size), jnp.float32, -bound1, bound1)
    b1 = jax.random.uniform(k2, (1, hidden_size), jnp.float32, -bound1, bound1)
    w2 = jax.random.uniform(k3, (hidden_size, output_dim), jnp.float32, -bound2, bound2)
    b2 = jax.random.uniform(k4, (1, output_dim), jnp.float32, -bound2, bound2)
    return w1, b1, w2, b2


def _apply_nonlinear(h, nonlinear):
    if nonlinear == "relu":
        return jnp.maximum(h, 0.0)
    if nonlinear == "tanh":
        return jnp.tanh(h)
    return h


def _reference_bf16(x, w1, b1, w2, b2, nonlinear):
    """Pure-JAX reference following the same bf16-matmul / f32-accumulate path."""
    h = jnp.dot(x.astype(jnp.bfloat16), w1.astype(jnp.bfloat16),
                preferred_element_type=jnp.float32) + jnp.reshape(b1, (1, -1))
    h = _apply_nonlinear(h, nonlinear)
    logits = jnp.dot(h.astype(jnp.bfloat16), w2.astype(jnp.bfloat16),
                     preferred_element_type=jnp.float32) + jnp.reshape(b2, (1, -1))
    return jax.nn.log_softmax(logits, axis=1)


def _reference_f32(x, w1, b1, w2, b2, nonlinear):
    """Full-f32 reference (matches PyTorch semantics exactly)."""
    h = _apply_nonlinear(jnp.dot(x, w1) + jnp.reshape(b1, (1, -1)), nonlinear)
    logits = jnp.dot(h, w2) + jnp.reshape(b2, (1, -1))
    return jax.nn.log_softmax(logits, axis=1)


if __name__ == "__main__":
    D_IN, HIDDEN, D_OUT = 32, 32, 16

    key = jax.random.PRNGKey(0)
    k_p, k1, k2, k3 = jax.random.split(key, 4)
    w1, b1, w2, b2 = init_params(k_p, D_IN, D_OUT, HIDDEN)

    # --- ReLU, small batch, f32 output (tight check against the bf16-path reference).
    params_relu = prepare_params(w1, b1, w2, b2, "relu")
    x = jax.random.normal(k1, (8, D_IN), jnp.float32)
    out = jax.block_until_ready(mlp_forward(x, params_relu, out_dtype=jnp.float32))
    ref = _reference_bf16(x, w1, b1, w2, b2, "relu")
    assert out.shape == (8, D_OUT)
    assert jnp.allclose(out, ref, atol=2e-4, rtol=2e-4), "mismatch (relu, B=8, f32 out)"

    # --- ReLU, non-multiple batch, default bf16 output (halved HBM write traffic).
    x2 = jax.random.normal(k2, (300, D_IN), jnp.float32)
    out2 = jax.block_until_ready(mlp_forward(x2, params_relu))
    ref2 = _reference_bf16(x2, w1, b1, w2, b2, "relu")
    assert out2.shape == (300, D_OUT)
    assert jnp.allclose(out2, ref2, atol=2e-2, rtol=2e-2), "mismatch (relu, B=300, bf16 out)"

    # --- Tanh, larger batch with an even multi-step grid (tile_b=512 -> grid (4,)).
    params_tanh = prepare_params(w1, b1, w2, b2, "tanh")
    x3 = jax.random.normal(k3, (2048, D_IN), jnp.float32)
    out3 = jax.block_until_ready(mlp_forward(x3, params_tanh, tile_b=512))
    ref3 = _reference_bf16(x3, w1, b1, w2, b2, "tanh")
    assert out3.shape == (2048, D_OUT)
    assert jnp.allclose(out3, ref3, atol=2e-2, rtol=2e-2), "mismatch (tanh, B=2048)"

    # --- Identity: folded single-matmul path, compared against the full-f32 model.
    params_id = prepare_params(w1, b1, w2, b2, "none")
    out4 = jax.block_until_ready(mlp_forward(x2, params_id, out_dtype=jnp.float32))
    ref4 = _reference_f32(x2, w1, b1, w2, b2, "none")
    assert out4.shape == (300, D_OUT)
    assert jnp.allclose(out4, ref4, atol=2e-2, rtol=2e-2), "mismatch (identity folded, B=300)"

    print("KERNEL_OK")
</pallas_src>

<mosaic_0001>
module attributes {stable_mosaic.version = 11 : i64} {
  func.func @_mlp2_kernel(%arg0: i32, %arg1: memref<16x32xbf16, #tpu.memory_space<vmem>>, %arg2: memref<32x128xbf16, #tpu.memory_space<vmem>>, %arg3: memref<1x128xf32, #tpu.memory_space<vmem>>, %arg4: memref<128x128xbf16, #tpu.memory_space<vmem>>, %arg5: memref<1x128xf32, #tpu.memory_space<vmem>>, %arg6: memref<16x128xf32, #tpu.memory_space<vmem>>) attributes {dimension_semantics = [#tpu.dimension_semantics<parallel>], iteration_bounds = array<i64: 1>, scalar_prefetch = 0 : i64, scratch_operands = 0 : i64, tpu.core_type = #tpu.core_type<tc>, window_params = [{transform_indices = @transform_0, window_bounds = array<i64: 16, 32>}, {pipeline_mode = #tpu.pipeline_mode<synchronous>, transform_indices = @transform_1, window_bounds = array<i64: 32, 128>}, {pipeline_mode = #tpu.pipeline_mode<synchronous>, transform_indices = @transform_2, window_bounds = array<i64: 1, 128>}, {pipeline_mode = #tpu.pipeline_mode<synchronous>, transform_indices = @transform_3, window_bounds = array<i64: 128, 128>}, {pipeline_mode = #tpu.pipeline_mode<synchronous>, transform_indices = @transform_4, window_bounds = array<i64: 1, 128>}, {transform_indices = @transform_5, window_bounds = array<i64: 16, 128>}]} {
    %c0 = arith.constant 0 : index
    %c0_0 = arith.constant 0 : index
    %0 = vector.load %arg1[%c0, %c0_0] : memref<16x32xbf16, #tpu.memory_space<vmem>>, vector<16x32xbf16>
    %c0_1 = arith.constant 0 : index
    %c0_2 = arith.constant 0 : index
    %1 = vector.load %arg2[%c0_1, %c0_2] : memref<32x128xbf16, #tpu.memory_space<vmem>>, vector<32x128xbf16>
    %cst = arith.constant dense<0.000000e+00> : vector<16x128xf32>
    %2 = tpu.matmul %0, %1, %cst {dimension_numbers = #tpu.dot_dimension_numbers<[1], [0], [0], [1], [0, 0, 1, 1], [], []>} : vector<16x32xbf16>, vector<32x128xbf16>, vector<16x128xf32> -> vector<16x128xf32>
    %c0_3 = arith.constant 0 : index
    %c0_4 = arith.constant 0 : index
    %3 = vector.load %arg3[%c0_3, %c0_4] : memref<1x128xf32, #tpu.memory_space<vmem>>, vector<1x128xf32>
    %4 = vector.broadcast %3 : vector<1x128xf32> to vector<16x128xf32>
    %5 = arith.addf %2, %4 : vector<16x128xf32>
    %cst_5 = arith.constant 0.000000e+00 : f32
    %6 = vector.broadcast %cst_5 : f32 to vector<16x128xf32>
    %7 = arith.maximumf %5, %6 : vector<16x128xf32>
    %8 = arith.truncf %7 : vector<16x128xf32> to vector<16x128xbf16>
    %c0_6 = arith.constant 0 : index
    %c0_7 = arith.constant 0 : index
    %9 = vector.load %arg4[%c0_6, %c0_7] : memref<128x128xbf16, #tpu.memory_space<vmem>>, vector<128x128xbf16>
    %cst_8 = arith.constant dense<0.000000e+00> : vector<16x128xf32>
    %10 = tpu.matmul %8, %9, %cst_8 {dimension_numbers = #tpu.dot_dimension_numbers<[1], [0], [0], [1], [0, 0, 1, 1], [], []>} : vector<16x128xbf16>, vector<128x128xbf16>, vector<16x128xf32> -> vector<16x128xf32>
    %c0_9 = arith.constant 0 : index
    %c0_10 = arith.constant 0 : index
    %11 = vector.load %arg5[%c0_9, %c0_10] : memref<1x128xf32, #tpu.memory_space<vmem>>, vector<1x128xf32>
    %12 = vector.broadcast %11 : vector<1x128xf32> to vector<16x128xf32>
    %13 = arith.addf %10, %12 : vector<16x128xf32>
    %cst_11 = arith.constant dense<0xFF800000> : vector<16xf32>
    %14 = vector.multi_reduction <maximumf>, %13, %cst_11 [1] : vector<16x128xf32> to vector<16xf32>
    %15 = vector.shape_cast %14 : vector<16xf32> to vector<16x1xf32>
    %16 = vector.broadcast %15 : vector<16x1xf32> to vector<16x128xf32>
    %17 = arith.subf %13, %16 : vector<16x128xf32>
    %18 = math.exp %17 : vector<16x128xf32>
    %cst_12 = arith.constant dense<0.000000e+00> : vector<16xf32>
    %19 = vector.multi_reduction <add>, %18, %cst_12 [1] : vector<16x128xf32> to vector<16xf32>
    %20 = vector.shape_cast %19 : vector<16xf32> to vector<16x1xf32>
    %21 = math.log %20 : vector<16x1xf32>
    %22 = vector.broadcast %21 : vector<16x1xf32> to vector<16x128xf32>
    %23 = arith.subf %17, %22 : vector<16x128xf32>
    %c0_13 = arith.constant 0 : index
    %c0_14 = arith.constant 0 : index
    %24 = vector.load %arg6[%c0_13, %c0_14] : memref<16x128xf32, #tpu.memory_space<vmem>>, vector<16x128xf32>
    tpu.vector_store %arg6[%c0_13, %c0_14], %23 {strides = array<i32>} : memref<16x128xf32, #tpu.memory_space<vmem>>, vector<16x128xf32>,
    return
  }
  func.func @transform_0(%arg0: i32) -> (i32, i32) {
    %c0_i32 = arith.constant 0 : i32
    %c0_i32_0 = arith.constant 0 : i32
    return %arg0, %c0_i32 : i32, i32
  }
  func.func @transform_1(%arg0: i32) -> (i32, i32) {
    %c0_i32 = arith.constant 0 : i32
    %c0_i32_0 = arith.constant 0 : i32
    %c0_i32_1 = arith.constant 0 : i32
    return %c0_i32, %c0_i32_0 : i32, i32
  }
  func.func @transform_2(%arg0: i32) -> (i32, i32) {
    %c0_i32 = arith.constant 0 : i32
    %c0_i32_0 = arith.constant 0 : i32
    %c0_i32_1 = arith.constant 0 : i32
    return %c0_i32, %c0_i32_0 : i32, i32
  }
  func.func @transform_3(%arg0: i32) -> (i32, i32) {
    %c0_i32 = arith.constant 0 : i32
    %c0_i32_0 = arith.constant 0 : i32
    %c0_i32_1 = arith.constant 0 : i32
    return %c0_i32, %c0_i32_0 : i32, i32
  }
  func.func @transform_4(%arg0: i32) -> (i32, i32) {
    %c0_i32 = arith.constant 0 : i32
    %c0_i32_0 = arith.constant 0 : i32
    %c0_i32_1 = arith.constant 0 : i32
    return %c0_i32, %c0_i32_0 : i32, i32
  }
  func.func @transform_5(%arg0: i32) -> (i32, i32) {
    %c0_i32 = arith.constant 0 : i32
    %c0_i32_0 = arith.constant 0 : i32
    return %arg0, %c0_i32 : i32, i32
  }
}

</mosaic_0001>

<bundles_post_ra>
// kernel: tpu_custom_call.1
= control target key start
LH: loop header
LB: loop body
LE: loop exit
PB: predicated region body
PF: predicated region fallthrough
CT: control target
= control target key end

     0   :  { %10 = vsyncpa [#allocation3], 0  ;;  %s473_s0 = inlined_call_operand.hbm [shape: bf16[16,32], index: 0, kind: input, shape index: {}]   ;;  %s474_s1 = inlined_call_operand.hbm [shape: bf16[32,128], index: 1, kind: input, shape index: {}]   ;;  %s475_s2 = inlined_call_operand.vmem [shape: f32[1,128], index: 2, kind: input, shape index: {}]   ;;  %s476_s3 = inlined_call_operand.hbm [shape: bf16[128,128], index: 3, kind: input, shape index: {}]   ;;  %s477_s4 = inlined_call_operand.vmem [shape: f32[1,128], index: 4, kind: input, shape index: {}]   ;;  %s478_s5 = inlined_call_operand.hbm [shape: f32[16,128], index: 5, kind: output, shape index: {}]  }
   0x1   :  { %11 = vsyncpa [#allocation6], 0 }
   0x2   :  { %12 = vsyncpa [#allocation4], 0  ;;  %s30_s20 = sshll.u32 %s474_s1, 4  ;;  %s417_s21 = smov [#allocation5]   ;;  %s31_s20 = int_to_ptr.hbm [resolvable:$true] %s30_s20 }
   0x3   :  { %s32_s22 = sshll.u32 %s417_s21, 4  ;;  %s17_s25 = sshll.u32 %s473_s0, 4  ;;  %s33_s22 = int_to_ptr.vmem [resolvable:$true] %s32_s22  ;;  %s18_s25 = int_to_ptr.hbm [resolvable:$true] %s17_s25 }
   0x4   :  { %s418_s26 = smov 64   ;;  %s419_s27 = smov 4  }
   0x5   :  { %38 = dma.hbm_to_vmem [thread:$0]  %s31_s20, 256, %s33_s22, [#allocation6], %s418_s26, %s418_s26, %s419_s27  }
   0x6   :  { %s420_s28 = smov [#allocation2]   ;;  %s45_s7 = sshll.u32 %s476_s3, 4  ;;  %s46_s7 = int_to_ptr.hbm [resolvable:$true] %s45_s7 }
   0x7   :  { %s19_s29 = sshll.u32 %s420_s28, 4  ;;  %s421_s1 = smov [#allocation7]   ;;  %s20_s29 = int_to_ptr.vmem [resolvable:$true] %s19_s29 }
   0x8   :  { %25 = dma.hbm_to_vmem [thread:$0]  %s18_s25, 128, %s20_s29, [#allocation3], %s418_s26, %s418_s26, %s419_s27  }
   0x9   :  { %s47_s8 = sshll.u32 %s421_s1, 4  ;;  %s48_s8 = int_to_ptr.vmem [resolvable:$true] %s47_s8 }
   0xa   :  { %53 = dma.hbm_to_vmem [thread:$0]  %s46_s7, 1024, %s48_s8, [#allocation6], %s418_s26, %s418_s26, %s419_s27  }
   0xb   :  { %411 = dma.done.wait [#allocation3], 128  }
   0xc   :  { %412 = vsyncadd [#allocation3], 4294967168 }
   0xd   :  { %413 = dma.done.wait [#allocation6], 1280  }
   0xe   :  { %414 = vsyncadd [#allocation6], 4294966016  ;;  %v288_v0 = vld [vmem:[#allocation5 + $0x8] sm:$0xff]  ;;  %v287_v2 = vld [vmem:[#allocation5] sm:$0xff]  ;;  %vm96_vm0 = vcmask 261120   ;;  %s227_s13 = sshll.u32 %s478_s5, 4  ;;  %s228_s13 = int_to_ptr.hbm [resolvable:$true] %s227_s13 }
   0xf   :  { %v296_v1 = vld [vmem:[#allocation7 + $0x38] sm:$0xff]  ;;  %106 = vmatpush.bf16.msra.mxu0 %v288_v0  ;;  %v295_v3 = vld [vmem:[#allocation7 + $0x30] sm:$0xff]  ;;  %v286_v4 = vld [vmem:[#allocation2] sm:$0xff]  ;;  %s423_s14 = smov 128   ;;  %s424_s15 = smov 8  }
  0x10   :  { %185 = vmatpush.bf16.msra.mxu1 %v296_v1  ;;  %v294_v5 = vld [vmem:[#allocation7 + $0x28] sm:$0xff]  ;;  %v293_v6 = vld [vmem:[#allocation7 + $0x20] sm:$0xff]  ;;  %v292_v7 = vld [vmem:[#allocation7 + $0x18] sm:$0xff] }
  0x11   :  { %v291_v8 = vld [vmem:[#allocation7 + $0x10] sm:$0xff]  ;;  %v290_v9 = vld [vmem:[#allocation7 + $0x8] sm:$0xff]  ;;  %v289_v10 = vld [vmem:[#allocation7] sm:$0xff] }
  0x12   :  { %v305_v12 = vld [vmem:[%s475_s2] ss:$0 sm:$0xff]  ;;  %s422_s2 = smov [#allocation8]  }
  0x13   :  { %107 = vmatpush.bf16.msra.mxu0 %v287_v2  ;;  %v306_v19 = vld [vmem:[%s477_s4] ss:$0 sm:$0xff]  ;;  %s225_s4 = sshll.u32 %s422_s2, 4  ;;  %s226_s4 = int_to_ptr.vmem [resolvable:$true] %s225_s4 }
  0x14   :  { %186 = vmatpush.bf16.msra.mxu1 %v295_v3 }
  0x16   :  { %253 = vmatmul.msk.bf16.vlgmr.msra.gmra.mxu0 %vm96_vm0, %v286_v4 }
  0x18   :  { %187 = vmatpush.bf16.msra.mxu1 %v294_v5 }
  0x1c   :  { %188 = vmatpush.bf16.msra.mxu1 %v293_v6 }
  0x20   :  { %189 = vmatpush.bf16.msra.mxu1 %v292_v7 }
  0x24   :  { %190 = vmatpush.bf16.msra.mxu1 %v291_v8 }
  0x28   :  { %191 = vmatpush.bf16.msra.mxu1 %v290_v9 }
  0x2c   :  { %192 = vmatpush.bf16.msra.mxu1 %v289_v10 }
  0x93   :  { %v109_v11 = vpop.f32.mrf.mxu0 }
  0x94   :  { %v110_v13 = vadd.f32 %v305_v12, %v109_v11 }
  0x96   :  { %v114_v16 = vmax.f32 %v110_v13, 0.0 }
  0x9b   :  { %v111_v14 = vpop.f32.mrf.mxu0 }
  0x9c   :  { %v112_v15 = vadd.f32 %v305_v12, %v111_v14 }
  0x9e   :  { %v115_v17 = vmax.f32 %v112_v15, 0.0 }
  0xa0   :  { %v116_v18 = vpack.c.bf16 %v115_v17, %v114_v16 }
  0xa2   :  { %193 = vmatmul.bf16.vlgmr.msra.gmra.mxu1 %v116_v18 }
 0x11f   :  { %v194_v20 = vpop.f32.mrf.mxu1 }
 0x120   :  { %v195_v21 = vadd.f32 %v306_v19, %v194_v20 }
 0x122   :  { %199 = vmax.xlane.f32.xlu0 %v195_v21 }
 0x127   :  { %v196_v22 = vpop.f32.mrf.mxu1 }
 0x128   :  { %v197_v23 = vadd.f32 %v306_v19, %v196_v22 }
 0x12a   :  { %201 = vmax.xlane.f32.xlu0 %v197_v23 }
 0x195   :  { %v200_v24 = vpop.xlane.xlu0 %199 }
 0x196   :  { %v203_v25 = vsub.f32 %v195_v21, %v200_v24 }
 0x198   :  { %v205_v26 = vmul.f32 1.442695, %v203_v25 }
 0x19a   :  { %307 = vpow2.f32 %v205_v26 }
 0x19d   :  { %v202_v27 = vpop.xlane.xlu0 %201 }
 0x19e   :  { %v204_v28 = vsub.f32 %v197_v23, %v202_v27 }
 0x1a0   :  { %v308_v29 = vpop.eup %307  ;;  %v207_v30 = vmul.f32 1.442695, %v204_v28 }
 0x1a1   :  { %209 = vadd.xlane.f32.xlu1 %v308_v29 }
 0x1a2   :  { %309 = vpow2.f32 %v207_v30 }
 0x1a8   :  { %v310_v31 = vpop.eup %309 }
 0x1a9   :  { %211 = vadd.xlane.f32.xlu1 %v310_v31 }
 0x214   :  { %v210_v32 = vpop.xlane.xlu1 %209 }
 0x215   :  { %311 = vlog2.f32 %v210_v32 }
 0x21b   :  { %v312_v33 = vpop.eup %311 }
 0x21c   :  { %v214_v34 = vmul.f32 0.6931472, %v312_v33  ;;  %v212_v35 = vpop.xlane.xlu1 %211 }
 0x21d   :  { %313 = vlog2.f32 %v212_v35 }
 0x21e   :  { %v217_v36 = vsub.f32 %v203_v25, %v214_v34 }
 0x220   :  { %219 = vst [vmem:[#allocation8] sm:$0xff] %v217_v36 }
 0x223   :  { %v314_v37 = vpop.eup %313 }
 0x224   :  { %v216_v38 = vmul.f32 0.6931472, %v314_v37 }
 0x226   :  { %v218_v39 = vsub.f32 %v204_v28, %v216_v38 }
 0x228   :  { %220 = vst [vmem:[#allocation8 + $0x8] sm:$0xff] %v218_v39 }
 0x229   :  { %233 = dma.vmem_to_hbm [thread:$0]  %s226_s4, 256, %s228_s13, [#allocation4], %s423_s14, %s423_s14, %s424_s15  }
 0x22a   :  { %415 = dma.done.wait [#allocation4], 256  }
 0x22b   :  { %416 = vsyncadd [#allocation4], 4294967040 }
 0x22c   :  { %238 = vsyncpa [#allocation3], 1 }
 0x22d   :  { %239 = vsyncpa [#allocation6], 1 }
 0x22e   :  { %240 = vsyncpa [#allocation4], 1 }

</bundles_post_ra>
